<compile_context>
chip_gen: v5e
topology: v5e:2x2
jax: 0.10.0
libtpu: 0.0.40
codegen_flags: <defaults>
</compile_context>

<pallas_src>
import jax
import jax.numpy as jnp
from jax import lax
from jax.experimental import pallas as pl
from jax.experimental.pallas import tpu as pltpu


_VMEM_BUDGET_BYTES = 48 * 1024 * 1024  # v7x-safe (64 MiB physical, 32 MiB default scoped)


def _make_sepconv_kernel(nb, h, w, h_out, w_out, c_in, c_out, kh, kw,
                         stride, dilation, padding, hp, wp):
    needs_pad = (hp != h) or (wp != w)

    def kernel(x_ref, dw_ref, pw_ref, o_ref, xpad_ref):
        # x_ref   : (NB, H, W*Cin)         fused un-padded input block
        # dw_ref  : (kh*kw, Wout*Cin)      depthwise weights pre-tiled across W
        # pw_ref  : (Wout*Cin, Wout*Cout)  block-diagonal pointwise weights
        # o_ref   : (NB, Hout, Wout*Cout)  lane-dense fused output block
        # xpad_ref: VMEM (NB, Hp, Wp*Cin)  zero-padded copy of the inputs
        if needs_pad:
            dt = xpad_ref.dtype
            top, bot = padding, padding + h
            left, right = padding * c_in, padding * c_in + w * c_in
            # Zero only the padding frame; the interior is overwritten below.
            if top > 0:
                xpad_ref[:, 0:top, :] = jnp.zeros((nb, top, wp * c_in), dt)
            if hp > bot:
                xpad_ref[:, bot:hp, :] = jnp.zeros((nb, hp - bot, wp * c_in), dt)
            if left > 0:
                xpad_ref[:, top:bot, 0:left] = jnp.zeros((nb, h, left), dt)
            if wp * c_in > right:
                xpad_ref[:, top:bot, right:wp * c_in] = jnp.zeros(
                    (nb, h, wp * c_in - right), dt)
            xpad_ref[:, top:bot, left:right] = x_ref[...]
            xsrc = xpad_ref[...]
        else:
            xsrc = x_ref[...]

        # --- depthwise conv: kh*kw shifted fused MACs on the VPU ---
        dwv = dw_ref[...].astype(jnp.float32)          # fetched once (constant index_map)
        acc = jnp.zeros((nb, h_out, w_out * c_in), jnp.float32)
        for iw in range(kw):
            w0 = iw * dilation * c_in
            if stride == 1:
                # lane-offset slice hoisted out of the ih loop (kw rotates total)
                col = xsrc[:, :, w0:w0 + w_out * c_in]
            for ih in range(kh):
                t = ih * kw + iw
                h0 = ih * dilation
                if stride == 1:
                    patch = col[:, h0:h0 + h_out, :]   # sublane-offset only
                else:
                    # TODO(synk): untested stride>1 fallback (not traced here).
                    rows = xsrc[:, h0:h0 + h_out * stride,
                                w0:w0 + w_out * stride * c_in]
                    rows = rows.reshape(nb, h_out, stride, w_out, stride * c_in)
                    patch = rows[:, :, 0, :, :c_in].reshape(nb, h_out, w_out * c_in)
                acc = acc + patch.astype(jnp.float32) * dwv[t]

        # --- pointwise 1x1 conv: ONE MXU matmul with M = NB*Hout ---
        y = jnp.dot(acc.reshape(nb * h_out, w_out * c_in),
                    pw_ref[...].astype(jnp.float32),
                    preferred_element_type=jnp.float32)
        o_ref[...] = y.reshape(nb, h_out, w_out * c_out).astype(o_ref.dtype)

    return kernel


def prepare_separable_weights(dw_weight, pw_weight, w_out):
    """Per-weight-update constants, hoisted out of the per-call hot path.

    dw_weight: (Cin, 1, KH, KW) depthwise weight   -> (KH*KW, Wout*Cin)
    pw_weight: (Cout, Cin, 1, 1) pointwise weight  -> (Wout*Cin, Wout*Cout)
    """
    c_in = dw_weight.shape[0]
    kh, kw = dw_weight.shape[2], dw_weight.shape[3]

    dw_kc = jnp.transpose(dw_weight[:, 0, :, :], (1, 2, 0))          # (kh,kw,Cin)
    dw_tiled = jnp.tile(dw_kc.reshape(kh * kw, 1, c_in),
                        (1, w_out, 1)).reshape(kh * kw, w_out * c_in)

    pw_mat = jnp.transpose(pw_weight[:, :, 0, 0], (1, 0))            # (Cin,Cout)
    eye = jnp.eye(w_out, dtype=pw_mat.dtype)
    pw_bd = jnp.einsum('wq,co->wcqo', eye, pw_mat).reshape(
        w_out * c_in, w_out * pw_weight.shape[0])
    return dw_tiled, pw_bd


def _pick_batch_block(n, fits):
    """Largest divisor of n that fits VMEM; target >=4 grid steps when n>=8."""
    start = n if n <= 4 else max(1, n // 4)
    for nb in range(start, 0, -1):
        if n % nb == 0 and fits(nb):
            return nb
    raise NotImplementedError(
        "single-image block exceeds the VMEM budget; "
        "TODO(synk): spatial (Hout) tiling path not implemented")


def separable_conv2d_nhwc(x_nhwc, dw_tiled, pw_bd, *, c_in, c_out, kh, kw,
                          stride=1, padding=0, dilation=1):
    """Fast path: fused-NHWC in/out, precomputed weights (no relayout passes)."""
    n, h, w, cx = x_nhwc.shape
    assert cx == c_in
    h_out = (h + 2 * padding - dilation * (kh - 1) - 1) // stride + 1
    w_out = (w + 2 * padding - dilation * (kw - 1) - 1) // stride + 1

    # Padded-scratch extents (large enough for the stride>1 fallback too).
    hp = max(h + 2 * padding, (kh - 1) * dilation + h_out * stride)
    wp = max(w + 2 * padding, (kw - 1) * dilation + w_out * stride)

    itemsize = x_nhwc.dtype.itemsize

    def fits(nb):
        in_block = nb * h * w * c_in * itemsize
        out_block = nb * h_out * w_out * c_out * itemsize
        scratch = nb * hp * wp * c_in * itemsize
        weights = (dw_tiled.size * dw_tiled.dtype.itemsize
                   + pw_bd.size * pw_bd.dtype.itemsize)
        # BlockSpec double-buffers inputs/outputs.
        return 2 * (in_block + out_block + weights) + scratch < _VMEM_BUDGET_BYTES

    nb = _pick_batch_block(n, fits)

    x_fused = x_nhwc.reshape(n, h, w * c_in)          # free reshape (lane merge)

    kernel = _make_sepconv_kernel(nb, h, w, h_out, w_out, c_in, c_out, kh, kw,
                                  stride, dilation, padding, hp, wp)

    cost = pl.CostEstimate(
        # depthwise VPU MACs + actual MXU work of the block-diagonal matmul
        flops=(2 * n * h_out * w_out * c_in * kh * kw
               + 2 * n * h_out * (w_out * c_in) * (w_out * c_out)),
        transcendentals=0,
        bytes_accessed=(n * h * w * c_in + n * h_out * w_out * c_out) * itemsize
                       + dw_tiled.size * dw_tiled.dtype.itemsize
                       + pw_bd.size * pw_bd.dtype.itemsize,
    )

    out_fused = pl.pallas_call(
        kernel,
        out_shape=jax.ShapeDtypeStruct((n, h_out, w_out * c_out), x_nhwc.dtype),
        grid_spec=pltpu.PrefetchScalarGridSpec(
            num_scalar_prefetch=0,
            grid=(n // nb,),
            in_specs=[
                pl.BlockSpec((nb, h, w * c_in), lambda b: (b, 0, 0)),
                pl.BlockSpec((kh * kw, w_out * c_in), lambda b: (0, 0)),
                pl.BlockSpec((w_out * c_in, w_out * c_out), lambda b: (0, 0)),
            ],
            out_specs=pl.BlockSpec((nb, h_out, w_out * c_out),
                                   lambda b: (b, 0, 0)),
            scratch_shapes=[pltpu.VMEM((nb, hp, wp * c_in), x_nhwc.dtype)],
        ),
        compiler_params=pltpu.CompilerParams(
            dimension_semantics=("parallel",),
            vmem_limit_bytes=32 * 1024 * 1024),
        cost_estimate=cost,
    )(x_fused, dw_tiled, pw_bd)

    return out_fused.reshape(n, h_out, w_out, c_out)   # NHWC


def separable_conv2d(x_nchw, dw_weight, pw_weight, *, stride=1, padding=0,
                     dilation=1):
    """NCHW wrapper preserving the PyTorch module contract.

    x_nchw:    (N, Cin, H, W)
    dw_weight: (Cin, 1, KH, KW)   depthwise (groups=Cin) conv weight
    pw_weight: (Cout, Cin, 1, 1)  pointwise conv weight
    returns:   (N, Cout, Hout, Wout)
    """
    n, c_in, h, w = x_nchw.shape
    kh, kw = dw_weight.shape[2], dw_weight.shape[3]
    c_out = pw_weight.shape[0]
    w_out = (w + 2 * padding - dilation * (kw - 1) - 1) // stride + 1

    # Weight prep: call once per weight update in real use (hoisted here as a
    # separate function so it stays off the per-activation hot path).
    dw_tiled, pw_bd = prepare_separable_weights(dw_weight, pw_weight, w_out)

    x_nhwc = jnp.transpose(x_nchw, (0, 2, 3, 1))
    out_nhwc = separable_conv2d_nhwc(
        x_nhwc, dw_tiled, pw_bd, c_in=c_in, c_out=c_out, kh=kh, kw=kw,
        stride=stride, padding=padding, dilation=dilation)
    return jnp.transpose(out_nhwc, (0, 3, 1, 2))                      # NCHW


def _reference(x_nchw, dw_weight, pw_weight, *, stride, padding, dilation):
    c_in = x_nchw.shape[1]
    dn = lax.conv_dimension_numbers(x_nchw.shape, dw_weight.shape,
                                    ("NCHW", "OIHW", "NCHW"))
    y = lax.conv_general_dilated(
        x_nchw, dw_weight, window_strides=(stride, stride),
        padding=[(padding, padding), (padding, padding)],
        rhs_dilation=(dilation, dilation), dimension_numbers=dn,
        feature_group_count=c_in)
    y = lax.conv_general_dilated(
        y, pw_weight, window_strides=(1, 1), padding=[(0, 0), (0, 0)],
        dimension_numbers=dn)
    return y


if __name__ == "__main__":
    # Module config: SeparableConv2d(in_channels=4, out_channels=8,
    #                                kernel_size=3, padding=1, bias=False)
    N, C_IN, H, W = 2, 4, 16, 16
    C_OUT, K = 8, 3
    STRIDE, PADDING, DILATION = 1, 1, 1

    key = jax.random.PRNGKey(0)
    kx, kdw, kpw = jax.random.split(key, 3)
    x = jax.random.normal(kx, (N, C_IN, H, W), dtype=jnp.float32)
    # Deterministic synthetic weights (PyTorch conv weight shapes).
    dw_weight = jax.random.normal(kdw, (C_IN, 1, K, K), dtype=jnp.float32) * 0.1
    pw_weight = jax.random.normal(kpw, (C_OUT, C_IN, 1, 1), dtype=jnp.float32) * 0.1

    out = separable_conv2d(x, dw_weight, pw_weight, stride=STRIDE,
                           padding=PADDING, dilation=DILATION)
    out = jax.block_until_ready(out)

    ref = _reference(x, dw_weight, pw_weight, stride=STRIDE,
                     padding=PADDING, dilation=DILATION)
    assert out.shape == ref.shape, (out.shape, ref.shape)
    assert jnp.allclose(out, ref, atol=1e-4, rtol=1e-4), "mismatch vs reference"

    print("KERNEL_OK")
</pallas_src>

<mosaic_0001>
module attributes {stable_mosaic.version = 11 : i64} {
  func.func @kernel(%arg0: i32, %arg1: memref<2x16x64xf32, #tpu.memory_space<vmem>>, %arg2: memref<9x64xf32, #tpu.memory_space<vmem>>, %arg3: memref<64x128xf32, #tpu.memory_space<vmem>>, %arg4: memref<2x16x128xf32, #tpu.memory_space<vmem>>, %arg5: memref<2x18x72xf32, #tpu.memory_space<vmem>>) attributes {dimension_semantics = [#tpu.dimension_semantics<parallel>], iteration_bounds = array<i64: 1>, scalar_prefetch = 0 : i64, scratch_operands = 1 : i64, tpu.core_type = #tpu.core_type<tc>, window_params = [{transform_indices = @transform_0, window_bounds = array<i64: 2, 16, 64>}, {pipeline_mode = #tpu.pipeline_mode<synchronous>, transform_indices = @transform_1, window_bounds = array<i64: 9, 64>}, {pipeline_mode = #tpu.pipeline_mode<synchronous>, transform_indices = @transform_2, window_bounds = array<i64: 64, 128>}, {transform_indices = @transform_3, window_bounds = array<i64: 2, 16, 128>}]} {
    %cst = arith.constant 0.000000e+00 : f32
    %0 = vector.broadcast %cst : f32 to vector<2x1x72xf32>
    %c0 = arith.constant 0 : index
    %c0_0 = arith.constant 0 : index
    %c0_1 = arith.constant 0 : index
    %1 = vector.load %arg5[%c0, %c0_0, %c0_1] : memref<2x18x72xf32, #tpu.memory_space<vmem>>, vector<2x1x72xf32>
    tpu.vector_store %arg5[%c0, %c0_0, %c0_1], %0 {strides = array<i32>} : memref<2x18x72xf32, #tpu.memory_space<vmem>>, vector<2x1x72xf32>,
    %cst_2 = arith.constant 0.000000e+00 : f32
    %2 = vector.broadcast %cst_2 : f32 to vector<2x1x72xf32>
    %c0_3 = arith.constant 0 : index
    %c17 = arith.constant 17 : index
    %c0_4 = arith.constant 0 : index
    %3 = vector.load %arg5[%c0_3, %c17, %c0_4] : memref<2x18x72xf32, #tpu.memory_space<vmem>>, vector<2x1x72xf32>
    tpu.vector_store %arg5[%c0_3, %c17, %c0_4], %2 {strides = array<i32>} : memref<2x18x72xf32, #tpu.memory_space<vmem>>, vector<2x1x72xf32>,
    %cst_5 = arith.constant 0.000000e+00 : f32
    %4 = vector.broadcast %cst_5 : f32 to vector<2x16x4xf32>
    %c0_6 = arith.constant 0 : index
    %c1 = arith.constant 1 : index
    %c0_7 = arith.constant 0 : index
    %5 = vector.load %arg5[%c0_6, %c1, %c0_7] : memref<2x18x72xf32, #tpu.memory_space<vmem>>, vector<2x16x4xf32>
    tpu.vector_store %arg5[%c0_6, %c1, %c0_7], %4 {strides = array<i32>} : memref<2x18x72xf32, #tpu.memory_space<vmem>>, vector<2x16x4xf32>,
    %cst_8 = arith.constant 0.000000e+00 : f32
    %6 = vector.broadcast %cst_8 : f32 to vector<2x16x4xf32>
    %c0_9 = arith.constant 0 : index
    %c1_10 = arith.constant 1 : index
    %c68 = arith.constant 68 : index
    %7 = vector.load %arg5[%c0_9, %c1_10, %c68] : memref<2x18x72xf32, #tpu.memory_space<vmem>>, vector<2x16x4xf32>
    tpu.vector_store %arg5[%c0_9, %c1_10, %c68], %6 {strides = array<i32>} : memref<2x18x72xf32, #tpu.memory_space<vmem>>, vector<2x16x4xf32>,
    %c0_11 = arith.constant 0 : index
    %c0_12 = arith.constant 0 : index
    %c0_13 = arith.constant 0 : index
    %8 = vector.load %arg1[%c0_11, %c0_12, %c0_13] : memref<2x16x64xf32, #tpu.memory_space<vmem>>, vector<2x16x64xf32>
    %c0_14 = arith.constant 0 : index
    %c1_15 = arith.constant 1 : index
    %c4 = arith.constant 4 : index
    %9 = vector.load %arg5[%c0_14, %c1_15, %c4] : memref<2x18x72xf32, #tpu.memory_space<vmem>>, vector<2x16x64xf32>
    tpu.vector_store %arg5[%c0_14, %c1_15, %c4], %8 {strides = array<i32>} : memref<2x18x72xf32, #tpu.memory_space<vmem>>, vector<2x16x64xf32>,
    %c0_16 = arith.constant 0 : index
    %c0_17 = arith.constant 0 : index
    %c0_18 = arith.constant 0 : index
    %10 = vector.load %arg5[%c0_16, %c0_17, %c0_18] : memref<2x18x72xf32, #tpu.memory_space<vmem>>, vector<2x18x72xf32>
    %c0_19 = arith.constant 0 : index
    %c0_20 = arith.constant 0 : index
    %11 = vector.load %arg2[%c0_19, %c0_20] : memref<9x64xf32, #tpu.memory_space<vmem>>, vector<9x64xf32>
    %cst_21 = arith.constant 0.000000e+00 : f32
    %12 = vector.broadcast %cst_21 : f32 to vector<2x16x64xf32>
    %13 = vector.extract_strided_slice %10 {offsets = [0, 0, 0], sizes = [2, 18, 64], strides = [1, 1, 1]} : vector<2x18x72xf32> to vector<2x18x64xf32>
    %14 = vector.extract_strided_slice %13 {offsets = [0, 0, 0], sizes = [2, 16, 64], strides = [1, 1, 1]} : vector<2x18x64xf32> to vector<2x16x64xf32>
    %15 = vector.extract_strided_slice %11 {offsets = [0, 0], sizes = [1, 64], strides = [1, 1]} : vector<9x64xf32> to vector<1x64xf32>
    %16 = vector.shape_cast %15 : vector<1x64xf32> to vector<64xf32>
    %17 = vector.shape_cast %16 : vector<64xf32> to vector<1x1x64xf32>
    %18 = vector.broadcast %17 : vector<1x1x64xf32> to vector<2x16x64xf32>
    %19 = arith.mulf %14, %18 : vector<2x16x64xf32>
    %20 = arith.addf %12, %19 : vector<2x16x64xf32>
    %21 = vector.extract_strided_slice %13 {offsets = [0, 1, 0], sizes = [2, 16, 64], strides = [1, 1, 1]} : vector<2x18x64xf32> to vector<2x16x64xf32>
    %22 = vector.extract_strided_slice %11 {offsets = [3, 0], sizes = [1, 64], strides = [1, 1]} : vector<9x64xf32> to vector<1x64xf32>
    %23 = vector.shape_cast %22 : vector<1x64xf32> to vector<64xf32>
    %24 = vector.shape_cast %23 : vector<64xf32> to vector<1x1x64xf32>
    %25 = vector.broadcast %24 : vector<1x1x64xf32> to vector<2x16x64xf32>
    %26 = arith.mulf %21, %25 : vector<2x16x64xf32>
    %27 = arith.addf %20, %26 : vector<2x16x64xf32>
    %28 = vector.extract_strided_slice %13 {offsets = [0, 2, 0], sizes = [2, 16, 64], strides = [1, 1, 1]} : vector<2x18x64xf32> to vector<2x16x64xf32>
    %29 = vector.extract_strided_slice %11 {offsets = [6, 0], sizes = [1, 64], strides = [1, 1]} : vector<9x64xf32> to vector<1x64xf32>
    %30 = vector.shape_cast %29 : vector<1x64xf32> to vector<64xf32>
    %31 = vector.shape_cast %30 : vector<64xf32> to vector<1x1x64xf32>
    %32 = vector.broadcast %31 : vector<1x1x64xf32> to vector<2x16x64xf32>
    %33 = arith.mulf %28, %32 : vector<2x16x64xf32>
    %34 = arith.addf %27, %33 : vector<2x16x64xf32>
    %35 = vector.extract_strided_slice %10 {offsets = [0, 0, 4], sizes = [2, 18, 64], strides = [1, 1, 1]} : vector<2x18x72xf32> to vector<2x18x64xf32>
    %36 = vector.extract_strided_slice %35 {offsets = [0, 0, 0], sizes = [2, 16, 64], strides = [1, 1, 1]} : vector<2x18x64xf32> to vector<2x16x64xf32>
    %37 = vector.extract_strided_slice %11 {offsets = [1, 0], sizes = [1, 64], strides = [1, 1]} : vector<9x64xf32> to vector<1x64xf32>
    %38 = vector.shape_cast %37 : vector<1x64xf32> to vector<64xf32>
    %39 = vector.shape_cast %38 : vector<64xf32> to vector<1x1x64xf32>
    %40 = vector.broadcast %39 : vector<1x1x64xf32> to vector<2x16x64xf32>
    %41 = arith.mulf %36, %40 : vector<2x16x64xf32>
    %42 = arith.addf %34, %41 : vector<2x16x64xf32>
    %43 = vector.extract_strided_slice %35 {offsets = [0, 1, 0], sizes = [2, 16, 64], strides = [1, 1, 1]} : vector<2x18x64xf32> to vector<2x16x64xf32>
    %44 = vector.extract_strided_slice %11 {offsets = [4, 0], sizes = [1, 64], strides = [1, 1]} : vector<9x64xf32> to vector<1x64xf32>
    %45 = vector.shape_cast %44 : vector<1x64xf32> to vector<64xf32>
    %46 = vector.shape_cast %45 : vector<64xf32> to vector<1x1x64xf32>
    %47 = vector.broadcast %46 : vector<1x1x64xf32> to vector<2x16x64xf32>
    %48 = arith.mulf %43, %47 : vector<2x16x64xf32>
    %49 = arith.addf %42, %48 : vector<2x16x64xf32>
    %50 = vector.extract_strided_slice %35 {offsets = [0, 2, 0], sizes = [2, 16, 64], strides = [1, 1, 1]} : vector<2x18x64xf32> to vector<2x16x64xf32>
    %51 = vector.extract_strided_slice %11 {offsets = [7, 0], sizes = [1, 64], strides = [1, 1]} : vector<9x64xf32> to vector<1x64xf32>
    %52 = vector.shape_cast %51 : vector<1x64xf32> to vector<64xf32>
    %53 = vector.shape_cast %52 : vector<64xf32> to vector<1x1x64xf32>
    %54 = vector.broadcast %53 : vector<1x1x64xf32> to vector<2x16x64xf32>
    %55 = arith.mulf %50, %54 : vector<2x16x64xf32>
    %56 = arith.addf %49, %55 : vector<2x16x64xf32>
    %57 = vector.extract_strided_slice %10 {offsets = [0, 0, 8], sizes = [2, 18, 64], strides = [1, 1, 1]} : vector<2x18x72xf32> to vector<2x18x64xf32>
    %58 = vector.extract_strided_slice %57 {offsets = [0, 0, 0], sizes = [2, 16, 64], strides = [1, 1, 1]} : vector<2x18x64xf32> to vector<2x16x64xf32>
    %59 = vector.extract_strided_slice %11 {offsets = [2, 0], sizes = [1, 64], strides = [1, 1]} : vector<9x64xf32> to vector<1x64xf32>
    %60 = vector.shape_cast %59 : vector<1x64xf32> to vector<64xf32>
    %61 = vector.shape_cast %60 : vector<64xf32> to vector<1x1x64xf32>
    %62 = vector.broadcast %61 : vector<1x1x64xf32> to vector<2x16x64xf32>
    %63 = arith.mulf %58, %62 : vector<2x16x64xf32>
    %64 = arith.addf %56, %63 : vector<2x16x64xf32>
    %65 = vector.extract_strided_slice %57 {offsets = [0, 1, 0], sizes = [2, 16, 64], strides = [1, 1, 1]} : vector<2x18x64xf32> to vector<2x16x64xf32>
    %66 = vector.extract_strided_slice %11 {offsets = [5, 0], sizes = [1, 64], strides = [1, 1]} : vector<9x64xf32> to vector<1x64xf32>
    %67 = vector.shape_cast %66 : vector<1x64xf32> to vector<64xf32>
    %68 = vector.shape_cast %67 : vector<64xf32> to vector<1x1x64xf32>
    %69 = vector.broadcast %68 : vector<1x1x64xf32> to vector<2x16x64xf32>
    %70 = arith.mulf %65, %69 : vector<2x16x64xf32>
    %71 = arith.addf %64, %70 : vector<2x16x64xf32>
    %72 = vector.extract_strided_slice %57 {offsets = [0, 2, 0], sizes = [2, 16, 64], strides = [1, 1, 1]} : vector<2x18x64xf32> to vector<2x16x64xf32>
    %73 = vector.extract_strided_slice %11 {offsets = [8, 0], sizes = [1, 64], strides = [1, 1]} : vector<9x64xf32> to vector<1x64xf32>
    %74 = vector.shape_cast %73 : vector<1x64xf32> to vector<64xf32>
    %75 = vector.shape_cast %74 : vector<64xf32> to vector<1x1x64xf32>
    %76 = vector.broadcast %75 : vector<1x1x64xf32> to vector<2x16x64xf32>
    %77 = arith.mulf %72, %76 : vector<2x16x64xf32>
    %78 = arith.addf %71, %77 : vector<2x16x64xf32>
    %79 = vector.shape_cast %78 : vector<2x16x64xf32> to vector<32x64xf32>
    %c0_22 = arith.constant 0 : index
    %c0_23 = arith.constant 0 : index
    %80 = vector.load %arg3[%c0_22, %c0_23] : memref<64x128xf32, #tpu.memory_space<vmem>>, vector<64x128xf32>
    %cst_24 = arith.constant dense<0.000000e+00> : vector<32x128xf32>
    %81 = tpu.matmul %79, %80, %cst_24 {dimension_numbers = #tpu.dot_dimension_numbers<[1], [0], [0], [1], [0, 0, 1, 1], [], []>} : vector<32x64xf32>, vector<64x128xf32>, vector<32x128xf32> -> vector<32x128xf32>
    %82 = vector.shape_cast %81 : vector<32x128xf32> to vector<2x16x128xf32>
    %c0_25 = arith.constant 0 : index
    %c0_26 = arith.constant 0 : index
    %c0_27 = arith.constant 0 : index
    %83 = vector.load %arg4[%c0_25, %c0_26, %c0_27] : memref<2x16x128xf32, #tpu.memory_space<vmem>>, vector<2x16x128xf32>
    tpu.vector_store %arg4[%c0_25, %c0_26, %c0_27], %82 {strides = array<i32>} : memref<2x16x128xf32, #tpu.memory_space<vmem>>, vector<2x16x128xf32>,
    return
  }
  func.func @transform_0(%arg0: i32) -> (i32, i32, i32) {
    %c0_i32 = arith.constant 0 : i32
    %c0_i32_0 = arith.constant 0 : i32
    %c0_i32_1 = arith.constant 0 : i32
    return %arg0, %c0_i32, %c0_i32_0 : i32, i32, i32
  }
  func.func @transform_1(%arg0: i32) -> (i32, i32) {
    %c0_i32 = arith.constant 0 : i32
    %c0_i32_0 = arith.constant 0 : i32
    %c0_i32_1 = arith.constant 0 : i32
    return %c0_i32, %c0_i32_0 : i32, i32
  }
  func.func @transform_2(%arg0: i32) -> (i32, i32) {
    %c0_i32 = arith.constant 0 : i32
    %c0_i32_0 = arith.constant 0 : i32
    %c0_i32_1 = arith.constant 0 : i32
    return %c0_i32, %c0_i32_0 : i32, i32
  }
  func.func @transform_3(%arg0: i32) -> (i32, i32, i32) {
    %c0_i32 = arith.constant 0 : i32
    %c0_i32_0 = arith.constant 0 : i32
    %c0_i32_1 = arith.constant 0 : i32
    return %arg0, %c0_i32, %c0_i32_0 : i32, i32, i32
  }
}

</mosaic_0001>

<bundles_post_ra>
// kernel: tpu_custom_call.1
= control target key start
LH: loop header
LB: loop body
LE: loop exit
PB: predicated region body
PF: predicated region fallthrough
CT: control target
= control target key end

     0   :  { %8 = vsyncpa [#allocation4], 0  ;;  %s865_s0 = inlined_call_operand.hbm [shape: f32[2,16,64], index: 0, kind: input, shape index: {}]   ;;  %s866_s1 = inlined_call_operand.hbm [shape: f32[9,64], index: 1, kind: input, shape index: {}]   ;;  %s867_s2 = inlined_call_operand.hbm [shape: f32[64,128], index: 2, kind: input, shape index: {}]   ;;  %s868_s3 = inlined_call_operand.hbm [shape: f32[2,16,128], index: 3, kind: output, shape index: {}]  }
   0x1   :  { %9 = vsyncpa [#allocation7], 0 }
   0x2   :  { %10 = vsyncpa [#allocation5], 0  ;;  %s28_s14 = sshll.u32 %s866_s1, 4  ;;  %s628_s15 = smov [#allocation6]   ;;  %s29_s14 = int_to_ptr.hbm [resolvable:$true] %s28_s14 }
   0x3   :  { %s30_s16 = sshll.u32 %s628_s15, 4  ;;  %s15_s19 = sshll.u32 %s865_s0, 4  ;;  %s31_s16 = int_to_ptr.vmem [resolvable:$true] %s30_s16  ;;  %s16_s19 = int_to_ptr.hbm [resolvable:$true] %s15_s19 }
   0x4   :  { %s629_s20 = smov 128   ;;  %s630_s21 = smov 8  }
   0x5   :  { %36 = dma.hbm_to_vmem [thread:$0]  %s29_s14, 256, %s31_s16, [#allocation7], %s629_s20, %s629_s20, %s630_s21  }
   0x6   :  { %s631_s22 = smov [#allocation3]   ;;  %s41_s1 = sshll.u32 %s867_s2, 4  ;;  %s42_s1 = int_to_ptr.hbm [resolvable:$true] %s41_s1 }
   0x7   :  { %s17_s23 = sshll.u32 %s631_s22, 4  ;;  %s632_s0 = smov [#allocation8]   ;;  %s18_s23 = int_to_ptr.vmem [resolvable:$true] %s17_s23 }
   0x8   :  { %23 = dma.hbm_to_vmem [thread:$0]  %s16_s19, 512, %s18_s23, [#allocation4], %s629_s20, %s629_s20, %s630_s21  }
   0x9   :  { %s43_s26 = sshll.u32 %s632_s0, 4  ;;  %s44_s26 = int_to_ptr.vmem [resolvable:$true] %s43_s26 }
   0xa   :  { %49 = dma.hbm_to_vmem [thread:$0]  %s42_s1, 1024, %s44_s26, [#allocation7], %s629_s20, %s629_s20, %s630_s21  }
   0xb   :  { %622 = dma.done.wait [#allocation4], 512  }
   0xc   :  { %623 = vsyncadd [#allocation4], 4294966784 }
   0xd   :  { %624 = dma.done.wait [#allocation7], 1280  }
   0xe   :  { %625 = vsyncadd [#allocation7], 4294966016  ;;  %v79_v0 = vld [vmem:[#allocation3 + $0x10] sm:$0xff]  ;;  %v77_v1 = vld [vmem:[#allocation3] sm:$0xff]  ;;  %s633_s2 = smov 4   ;;  %vm67_vm0 = vcmask 31744  }
   0xf   :  { %89 = vrot.lane.b32.xlu0 %v79_v0, %s633_s2  ;;  %85 = vrot.lane.b32.xlu1 %v77_v1, %s633_s2  ;;  %v676_v2 = vld [vmem:[#allocation6] sm:$0xff]  ;;  %v80_v4 = vld [vmem:[#allocation3 + $0x18] sm:$0xff]  ;;  %v78_v5 = vld [vmem:[#allocation3 + $0x8] sm:$0xff]  ;;  %vm72_vm1 = vcmask 589344   ;;  %v634_v11 = vmov 0.0   ;;  %vm62_vm2 = vcmask 581632  }
  0x10   :  { %v212_v3 = vperm.slane %v676_v2, 4  ;;  %v183_v6 = vperm.slane %v676_v2, 1  ;;  %v255_v7 = vperm.slane %v676_v2, 7  ;;  %v327_v8 = vperm.slane %v676_v2, 5  ;;  %v525_v10 = vld [vmem:[#allocation6 + $0x8] ss:$0 sm:$0xff] }
  0x11   :  { %v298_v9 = vperm.slane %v676_v2, 2  ;;  %70 = vst.msk [vmem:[#allocation2 + $0x19] sm:$0xff] %vm67_vm0, %v634_v11  ;;  %vm97_vm3 = vcmask 556064   ;;  %s635_s27 = smov 120   ;;  %s636_s28 = smov 124   ;;  %vm132_vm4 = vcmask 1046528  }
  0x12   :  { %214 = vrot.lane.b32.xlu2 %v212_v3, %s633_s2  ;;  %75 = vst.msk [vmem:[#allocation2 + $0x19] sm:$0xff] %vm72_vm1, %v634_v11  ;;  %v119_v36 = vperm.slane %v676_v2, 3  ;;  %v151_v37 = vperm.slane %v676_v2, 6  ;;  %vm164_vm5 = vcmask 1045504   ;;  %v110_v39 = vperm.slane %v676_v2, 0  ;;  %s637_s29 = smov [#allocation9]  }
  0x13   :  { %68 = vst.msk [vmem:[#allocation2 + $0x1] sm:$0xff] %vm67_vm0, %v634_v11  ;;  %vm421_vm6 = vcmask 523264   ;;  %s471_s30 = sshll.u32 %s637_s29, 4  ;;  %s473_s6 = sshll.u32 %s868_s3, 4  ;;  %s472_s30 = int_to_ptr.vmem [resolvable:$true] %s471_s30  ;;  %s474_s6 = int_to_ptr.hbm [resolvable:$true] %s473_s6 }
  0x14   :  { %69 = vst.msk [vmem:[#allocation2 + $0x9] sm:$0xff] %vm67_vm0, %v634_v11 }
  0x15   :  { %71 = vst.msk [vmem:[#allocation2 + $0x21] sm:$0xff] %vm67_vm0, %v634_v11 }
  0x16   :  { %73 = vst.msk [vmem:[#allocation2 + $0x1] sm:$0xff] %vm72_vm1, %v634_v11 }
  0x17   :  { %91 = vrot.lane.b32.xlu0 %v80_v4, %s633_s2  ;;  %87 = vrot.lane.b32.xlu1 %v78_v5, %s633_s2  ;;  %74 = vst.msk [vmem:[#allocation2 + $0x9] sm:$0xff] %vm72_vm1, %v634_v11 }
  0x18   :  { %76 = vst.msk [vmem:[#allocation2 + $0x21] sm:$0xff] %vm72_vm1, %v634_v11 }
  0x19   :  { %64 = vst.msk [vmem:[#allocation2 + $0x18] sm:$0x1] %vm62_vm2, %v634_v11 }
  0x1a   :  { %185 = vrot.lane.b32.xlu2 %v183_v6, %s633_s2  ;;  %63 = vst.msk [vmem:[#allocation2] sm:$0x1] %vm62_vm2, %v634_v11 }
  0x1b   :  { %65 = vst.msk [vmem:[#allocation2 + $0x11] sm:$0x1] %vm62_vm2, %v634_v11 }
  0x1c   :  { %66 = vst.msk [vmem:[#allocation2 + $0x29] sm:$0x1] %vm62_vm2, %v634_v11 }
  0x1f   :  { %257 = vrot.lane.b32.xlu0 %v255_v7, %s633_s2  ;;  %329 = vrot.lane.b32.xlu1 %v327_v8, %s630_s21 }
  0x22   :  { %300 = vrot.lane.b32.xlu2 %v298_v9, %s630_s21 }
  0x27   :  { %372 = vrot.lane.b32.xlu0 %v525_v10, %s630_s21 }
  0x6c   :  { %v686_v12 = vpop.permute.xlu2 %214 }
  0x74   :  { %v186_v13 = vpop.permute.xlu2 %185 }
  0x7c   :  { %v301_v16 = vpop.permute.xlu2 %300 }
  0x81   :  { %v90_v14 = vpop.permute.xlu0 %89  ;;  %v86_v15 = vpop.permute.xlu1 %85 }
  0x82   :  { %100 = vst.msk [vmem:[#allocation2 + $0x19] sm:$0xff] %vm97_vm3, %v90_v14 }
  0x83   :  { %98 = vst.msk [vmem:[#allocation2 + $0x1] sm:$0xff] %vm97_vm3, %v86_v15 }
  0x89   :  { %v92_v17 = vpop.permute.xlu0 %91  ;;  %v88_v18 = vpop.permute.xlu1 %87  ;;  %v688_v19 = vld [vmem:[#allocation2 + $0x18] sm:$0xff] }
  0x8a   :  { %101 = vst.msk [vmem:[#allocation2 + $0x21] sm:$0xff] %vm97_vm3, %v92_v17  ;;  %v305_v20 = vmul.f32 %v301_v16, %v688_v19  ;;  %v190_v21 = vmul.f32 %v186_v13, %v688_v19  ;;  %v694_v22 = vld [vmem:[#allocation2] sm:$0xff]  ;;  %v220_v23 = vmul.f32 %v686_v12, %v688_v19  ;;  %v123_v46 = vmul.f32 %v119_v36, %v688_v19 }
  0x8b   :  { %99 = vst.msk [vmem:[#allocation2 + $0x9] sm:$0xff] %vm97_vm3, %v88_v18  ;;  %v188_v26 = vmul.f32 %v186_v13, %v694_v22  ;;  %v155_v47 = vmul.f32 %v151_v37, %v688_v19  ;;  %v120_v48 = vmul.f32 %v119_v36, %v694_v22  ;;  %v152_v49 = vmul.f32 %v151_v37, %v694_v22 }
  0x8c   :  { %315 = vrot.lane.b32.xlu0 %v305_v20, %s635_s27  ;;  %200 = vrot.lane.b32.xlu1 %v190_v21, %s636_s28  ;;  %v234_v30 = vrot.slane %v220_v23, 1  ;;  %v113_v51 = vmul.f32 %v110_v39, %v688_v19  ;;  %v303_v53 = vmul.f32 %v301_v16, %v694_v22  ;;  %v111_v55 = vmul.f32 %v110_v39, %v694_v22 }
  0x8d   :  { %v138_v58 = vrot.slane %v123_v46, 1  ;;  %v170_v59 = vrot.slane %v155_v47, 2  ;;  %v133_v62 = vrot.slane %v120_v48, 1  ;;  %v165_v63 = vrot.slane %v152_v49, 2 }
  0x91   :  { %v698_v24 = vld [vmem:[#allocation2 + $0x20] sm:$0xff]  ;;  %v706_v28 = vpop.permute.xlu0 %257  ;;  %v708_v29 = vld [vmem:[#allocation2 + $0x28] sm:$0x3] }
  0x92   :  { %v191_v25 = vmul.f32 %v186_v13, %v698_v24  ;;  %v704_v27 = vmul.f32 %v686_v12, %v698_v24  ;;  %v718_v33 = vmul.f32 %v706_v28, %v698_v24  ;;  %v265_v34 = vmul.f32 %v706_v28, %v708_v29  ;;  %v723_v35 = vld [vmem:[#allocation2 + $0x8] sm:$0xff]  ;;  %v727_v38 = vld [vmem:[#allocation2 + $0x10] sm:$0x3] }
  0x93   :  { %v189_v40 = vmul.f32 %v186_v13, %v723_v35  ;;  %v306_v41 = vmul.f32 %v301_v16, %v698_v24  ;;  %v735_v44 = vmul.f32 %v686_v12, %v723_v35  ;;  %v219_v45 = vmul.f32 %v686_v12, %v727_v38 }
  0x94   :  { %202 = vrot.lane.b32.xlu2 %v191_v25, %s636_s28  ;;  %196 = vrot.lane.b32.xlu1 %v188_v26, %s636_s28  ;;  %v235_v31 = vrot.slane %v704_v27, 1  ;;  %v278_v42 = vrot.slane %v718_v33, 2  ;;  %v280_v43 = vrot.slane %v265_v34, 2  ;;  %v263_v50 = vmul.f32 %v706_v28, %v688_v19 }
  0x95   :  { %v222_v54 = vmul.f32 %v686_v12, %v708_v29  ;;  %v230_v56 = vrot.slane %v735_v44, 1  ;;  %v232_v57 = vrot.slane %v219_v45, 1  ;;  %v304_v60 = vmul.f32 %v301_v16, %v723_v35 }
  0x96   :  { %v236_v32 = vsel %vm132_vm4, %v234_v30, %v235_v31  ;;  %v281_v52 = vsel %vm164_vm5, %v278_v42, %v280_v43  ;;  %v124_v61 = vmul.f32 %v119_v36, %v698_v24  ;;  %v277_v0 = vrot.slane %v263_v50, 2 }
  0x97   :  { %243 = vrot.lane.b32.xlu0 %v236_v32, %s636_s28  ;;  %v260_v1 = vmul.f32 %v706_v28, %v694_v22  ;;  %v763_v2 = vmul.f32 %v706_v28, %v723_v35  ;;  %v125_v3 = vmul.f32 %v119_v36, %v708_v29  ;;  %v237_v4 = vrot.slane %v222_v54, 1  ;;  %v330_v32 = vpop.permute.xlu1 %329 }
  0x98   :  { %v139_v5 = vrot.slane %v124_v61, 1  ;;  %v156_v6 = vmul.f32 %v151_v37, %v698_v24  ;;  %v157_v7 = vmul.f32 %v151_v37, %v708_v29  ;;  %v233_v8 = vsel %vm132_vm4, %v230_v56, %v232_v57 }
  0x99   :  { %v114_v9 = vmul.f32 %v110_v39, %v698_v24  ;;  %v141_v10 = vrot.slane %v125_v3, 1  ;;  %v112_v11 = vmul.f32 %v110_v39, %v723_v35  ;;  %v121_v15 = vmul.f32 %v119_v36, %v723_v35  ;;  %v373_v54 = vpop.permute.xlu0 %372 }
  0x9a   :  { %v171_v13 = vrot.slane %v156_v6, 2  ;;  %v173_v14 = vrot.slane %v157_v7, 2  ;;  %v122_v16 = vmul.f32 %v119_v36, %v727_v38  ;;  %v153_v18 = vmul.f32 %v151_v37, %v723_v35 }
  0x9b   :  { %v142_v17 = vsel %vm132_vm4, %v139_v5, %v141_v10  ;;  %v154_v20 = vmul.f32 %v151_v37, %v727_v38  ;;  %v140_v21 = vsel %vm132_vm4, %v138_v58, %v139_v5  ;;  %v134_v26 = vrot.slane %v121_v15, 1 }
  0x9c   :  { %198 = vrot.lane.b32.xlu2 %v189_v40, %s636_s28  ;;  %317 = vrot.lane.b32.xlu1 %v306_v41, %s635_s27  ;;  %v150_v23 = vadd.f32 %v142_v17, %v114_v9  ;;  %v174_v25 = vsel %vm164_vm5, %v171_v13, %v173_v14  ;;  %v136_v30 = vrot.slane %v122_v16, 1  ;;  %v166_v34 = vrot.slane %v153_v18, 2 }
  0x9d   :  { %v168_v39 = vrot.slane %v154_v20, 2  ;;  %v149_v40 = vadd.f32 %v140_v21, %v113_v51  ;;  %v172_v36 = vsel %vm164_vm5, %v170_v59, %v171_v13  ;;  %v272_v41 = vrot.slane %v260_v1, 2 }
  0x9e   :  { %v784_v43 = vadd.f32 %v174_v25, %v150_v23  ;;  %v137_v37 = vsel %vm132_vm4, %v134_v26, %v136_v30  ;;  %v135_v45 = vsel %vm132_vm4, %v133_v62, %v134_v26  ;;  %v279_v50 = vsel %vm164_vm5, %v277_v0, %v278_v42  ;;  %v420_v26 = vld [vmem:[#allocation8 + $0x38] sm:$0xff]  ;;  %v419_v30 = vld [vmem:[#allocation8 + $0x30] sm:$0xff] }
  0x9f   :  { %288 = vrot.lane.b32.xlu0 %v281_v52, %s636_s28  ;;  %v148_v46 = vadd.f32 %v137_v37, %v112_v11  ;;  %v169_v47 = vsel %vm164_vm5, %v166_v34, %v168_v39  ;;  %v789_v48 = vadd.f32 %v172_v36, %v149_v40  ;;  %v147_v49 = vadd.f32 %v135_v45, %v111_v55  ;;  %v418_v39 = vld [vmem:[#allocation8 + $0x28] sm:$0xff]  ;;  %v417_v40 = vld [vmem:[#allocation8 + $0x20] sm:$0xff]  ;;  %v416_v36 = vld [vmem:[#allocation8 + $0x18] sm:$0xff] }
  0xa0   :  { %v273_v51 = vrot.slane %v763_v2, 2  ;;  %v335_v52 = vmul.f32 %v330_v32, %v688_v19  ;;  %v238_v57 = vsel %vm132_vm4, %v235_v31, %v237_v4  ;;  %v336_v58 = vmul.f32 %v330_v32, %v698_v24  ;;  %492 = vmatpush.msra.mxu2 %v420_v26  ;;  %493 = vmatpush.msra.mxu3 %v420_v26 }
  0xa1   :  { %v801_v59 = vadd.f32 %v169_v47, %v148_v46  ;;  %v217_v33 = vmul.f32 %v686_v12, %v694_v22  ;;  %v380_v27 = vmul.f32 %v373_v54, %v708_v29  ;;  %v337_v12 = vmul.f32 %v330_v32, %v708_v29  ;;  %442 = vmatpush.msra.mxu0 %v420_v26  ;;  %v414_v46 = vld [vmem:[#allocation8 + $0x8] sm:$0xff]  ;;  %v413_v47 = vld [vmem:[#allocation8] sm:$0xff] }
  0xa2   :  { %v274_v42 = vsel %vm164_vm5, %v272_v41, %v273_v51  ;;  %v349_v31 = vrot.slane %v335_v52, 1  ;;  %v350_v61 = vrot.slane %v336_v58, 1  ;;  %v332_v4 = vmul.f32 %v330_v32, %v694_v22  ;;  %491 = vmatpush.msra.mxu1 %v420_v26  ;;  %495 = vmatpush.msra.mxu2 %v419_v30  ;;  %v415_v41 = vld [vmem:[#allocation8 + $0x10] sm:$0xff] }
  0xa3   :  { %v229_v62 = vrot.slane %v217_v33, 1  ;;  %v395_v0 = vrot.slane %v380_v27, 2  ;;  %v333_v5 = vmul.f32 %v330_v32, %v723_v35  ;;  %v352_v44 = vrot.slane %v337_v12, 1  ;;  %496 = vmatpush.msra.mxu3 %v419_v30  ;;  %443 = vmatpush.msra.mxu0 %v419_v30 }
  0xa4   :  { %313 = vrot.lane.b32.xlu2 %v304_v60, %s635_s27  ;;  %311 = vrot.lane.b32.xlu1 %v303_v53, %s635_s27  ;;  %v167_v53 = vsel %vm164_vm5, %v165_v63, %v166_v34  ;;  %v379_v60 = vmul.f32 %v373_v54, %v698_v24  ;;  %v351_v2 = vsel %vm132_vm4, %v349_v31, %v350_v61  ;;  %v344_v6 = vrot.slane %v332_v4, 1 }
  0xa5   :  { %v803_v55 = vadd.f32 %v167_v53, %v147_v49  ;;  %v231_v1 = vsel %vm132_vm4, %v229_v62, %v230_v56  ;;  %v262_v24 = vmul.f32 %v706_v28, %v727_v38  ;;  %v345_v7 = vrot.slane %v333_v5, 1  ;;  %494 = vmatpush.msra.mxu1 %v419_v30  ;;  %498 = vmatpush.msra.mxu2 %v418_v39 }
  0xa6   :  { %v393_v63 = vrot.slane %v379_v60, 2  ;;  %v353_v29 = vsel %vm132_vm4, %v350_v61, %v352_v44  ;;  %v334_v9 = vmul.f32 %v330_v32, %v727_v38  ;;  %v376_v11 = vmul.f32 %v373_v54, %v723_v35  ;;  %499 = vmatpush.msra.mxu3 %v418_v39  ;;  %444 = vmatpush.msra.mxu0 %v418_v39 }
  0xa7   :  { %241 = vrot.lane.b32.xlu0 %v233_v8, %s636_s28  ;;  %v275_v56 = vrot.slane %v262_v24, 2  ;;  %v378_v8 = vmul.f32 %v373_v54, %v688_v19  ;;  %v346_v10 = vsel %vm132_vm4, %v344_v6, %v345_v7  ;;  %v377_v13 = vmul.f32 %v373_v54, %v727_v38  ;;  %497 = vmatpush.msra.mxu1 %v418_v39 }
  0xa8   :  { %v396_v3 = vsel %vm164_vm5, %v393_v63, %v395_v0  ;;  %v347_v15 = vrot.slane %v334_v9, 1  ;;  %v388_v16 = vrot.slane %v376_v11, 2  ;;  %v375_v20 = vmul.f32 %v373_v54, %v694_v22  ;;  %501 = vmatpush.msra.mxu2 %v417_v40  ;;  %502 = vmatpush.msra.mxu3 %v417_v40 }
  0xa9   :  { %v276_v28 = vsel %vm164_vm5, %v273_v51, %v275_v56  ;;  %v392_v14 = vrot.slane %v378_v8, 2  ;;  %v390_v17 = vrot.slane %v377_v13, 2  ;;  %445 = vmatpush.msra.mxu0 %v417_v40  ;;  %500 = vmatpush.msra.mxu1 %v417_v40 }
  0xaa   :  { %v348_v18 = vsel %vm132_vm4, %v345_v7, %v347_v15  ;;  %v387_v38 = vrot.slane %v375_v20, 2  ;;  %504 = vmatpush.msra.mxu2 %v416_v36  ;;  %505 = vmatpush.msra.mxu3 %v416_v36 }
  0xab   :  { %v394_v19 = vsel %vm164_vm5, %v392_v14, %v393_v63  ;;  %v391_v35 = vsel %vm164_vm5, %v388_v16, %v390_v17  ;;  %446 = vmatpush.msra.mxu0 %v416_v36  ;;  %503 = vmatpush.msra.mxu1 %v416_v36 }
  0xac   :  { %286 = vrot.lane.b32.xlu2 %v279_v50, %s636_s28  ;;  %245 = vrot.lane.b32.xlu1 %v238_v57, %s636_s28  ;;  %v389_v21 = vsel %vm164_vm5, %v387_v38, %v388_v16 }
  0xad   :  { %507 = vmatpush.msra.mxu2 %v415_v41  ;;  %508 = vmatpush.msra.mxu3 %v415_v41 }
  0xae   :  { %447 = vmatpush.msra.mxu0 %v415_v41  ;;  %506 = vmatpush.msra.mxu1 %v415_v41 }
  0xaf   :  { %282 = vrot.lane.b32.xlu0 %v274_v42, %s636_s28  ;;  %510 = vmatpush.msra.mxu2 %v414_v46 }
  0xb0   :  { %511 = vmatpush.msra.mxu3 %v414_v46  ;;  %448 = vmatpush.msra.mxu0 %v414_v46 }
  0xb1   :  { %509 = vmatpush.msra.mxu1 %v414_v46  ;;  %513 = vmatpush.msra.mxu2 %v413_v47 }
  0xb2   :  { %514 = vmatpush.msra.mxu3 %v413_v47  ;;  %449 = vmatpush.msra.mxu0 %v413_v47 }
  0xb3   :  { %512 = vmatpush.msra.mxu1 %v413_v47 }
  0xb4   :  { %239 = vrot.lane.b32.xlu2 %v231_v1, %s636_s28  ;;  %358 = vrot.lane.b32.xlu1 %v351_v2, %s635_s27 }
  0xb7   :  { %403 = vrot.lane.b32.xlu0 %v396_v3, %s635_s27 }
  0xbc   :  { %360 = vrot.lane.b32.xlu2 %v353_v29, %s635_s27  ;;  %284 = vrot.lane.b32.xlu1 %v276_v28, %s636_s28 }
  0xbf   :  { %354 = vrot.lane.b32.xlu0 %v346_v10, %s635_s27 }
  0xc4   :  { %401 = vrot.lane.b32.xlu2 %v394_v19, %s635_s27  ;;  %356 = vrot.lane.b32.xlu1 %v348_v18, %s635_s27 }
  0xc7   :  { %399 = vrot.lane.b32.xlu0 %v391_v35, %s635_s27 }
  0xcc   :  { %397 = vrot.lane.b32.xlu2 %v389_v21, %s635_s27 }
  0xee   :  { %v203_v23 = vpop.permute.xlu2 %202 }
  0xef   :  { %v211_v58 = vadd.f32 %v203_v23, %v784_v43 }
  0xf6   :  { %v845_v25 = vpop.permute.xlu2 %198 }
  0xf7   :  { %v209_v56 = vadd.f32 %v845_v25, %v801_v59 }
  0xfe   :  { %v201_v22 = vpop.permute.xlu1 %200  ;;  %v847_v32 = vpop.permute.xlu2 %313 }
  0xff   :  { %v316_v34 = vpop.permute.xlu0 %315  ;;  %v210_v57 = vadd.f32 %v201_v22, %v789_v48 }
 0x106   :  { %v197_v37 = vpop.permute.xlu1 %196  ;;  %v287_v49 = vpop.permute.xlu2 %286 }
 0x107   :  { %v208_v2 = vadd.f32 %v197_v37, %v803_v55 }
 0x109   :  { %v244_v45 = vpop.permute.xlu0 %243 }
 0x10a   :  { %v253_v33 = vadd.f32 %v244_v45, %v210_v57 }
 0x10c   :  { %v296_v61 = vadd.f32 %v287_v49, %v253_v33 }
 0x10e   :  { %v318_v50 = vpop.permute.xlu1 %317  ;;  %v240_v52 = vpop.permute.xlu2 %239  ;;  %v325_v0 = vadd.f32 %v316_v34, %v296_v61 }
 0x10f   :  { %v251_v48 = vadd.f32 %v240_v52, %v208_v2 }
 0x111   :  { %v289_v51 = vpop.permute.xlu0 %288 }
 0x116   :  { %v312_v53 = vpop.permute.xlu1 %311  ;;  %v361_v42 = vpop.permute.xlu2 %360 }
 0x119   :  { %v242_v54 = vpop.permute.xlu0 %241 }
 0x11a   :  { %v252_v7 = vadd.f32 %v242_v54, %v209_v56 }
 0x11e   :  { %v246_v60 = vpop.permute.xlu1 %245  ;;  %v402_v3 = vpop.permute.xlu2 %401 }
 0x11f   :  { %v254_v27 = vadd.f32 %v246_v60, %v211_v58 }
 0x121   :  { %v283_v31 = vpop.permute.xlu0 %282  ;;  %v297_v62 = vadd.f32 %v289_v51, %v254_v27 }
 0x122   :  { %v294_v44 = vadd.f32 %v283_v31, %v251_v48 }
 0x123   :  { %v326_v63 = vadd.f32 %v318_v50, %v297_v62 }
 0x124   :  { %v323_v29 = vadd.f32 %v312_v53, %v294_v44 }
 0x125   :  { %v369_v24 = vadd.f32 %v361_v42, %v326_v63 }
 0x126   :  { %v359_v1 = vpop.permute.xlu1 %358  ;;  %v398_v9 = vpop.permute.xlu2 %397 }
 0x127   :  { %v368_v12 = vadd.f32 %v359_v1, %v325_v0 }
 0x129   :  { %v404_v4 = vpop.permute.xlu0 %403  ;;  %v411_v5 = vadd.f32 %v402_v3, %v368_v12 }
 0x12a   :  { %v412_v43 = vadd.f32 %v404_v4, %v369_v24 }
 0x12b   :  { %489 = vmatmul.msk.f32.vlgmr.msra.gmra.mxu2 %vm421_vm6, %v411_v5 }
 0x12c   :  { %490 = vmatmul.msk.f32.vlgmr.msra.gmra.mxu3 %vm421_vm6, %v412_v43 }
 0x12e   :  { %v285_v6 = vpop.permute.xlu1 %284 }
 0x12f   :  { %v295_v28 = vadd.f32 %v285_v6, %v252_v7 }
 0x131   :  { %v355_v55 = vpop.permute.xlu0 %354  ;;  %v324_v11 = vadd.f32 %v847_v32, %v295_v28 }
 0x132   :  { %v366_v8 = vadd.f32 %v355_v55, %v323_v29 }
 0x134   :  { %v409_v10 = vadd.f32 %v398_v9, %v366_v8 }
 0x136   :  { %487 = vmatmul.msk.f32.vlgmr.msra.gmra.mxu0 %vm421_vm6, %v409_v10  ;;  %v357_v13 = vpop.permute.xlu1 %356 }
 0x137   :  { %v367_v14 = vadd.f32 %v357_v13, %v324_v11 }
 0x139   :  { %v400_v15 = vpop.permute.xlu0 %399 }
 0x13a   :  { %v410_v16 = vadd.f32 %v400_v15, %v367_v14 }
 0x13c   :  { %488 = vmatmul.msk.f32.vlgmr.msra.gmra.mxu1 %vm421_vm6, %v410_v16 }
 0x1ae   :  { %v457_v17 = vpop.f32.mrf.mxu2 }
 0x1af   :  { %v460_v59 = vpop.f32.mrf.mxu3  ;;  %465 = vst [vmem:[#allocation9 + $0x10] sm:$0xff] %v457_v17 }
 0x1b0   :  { %466 = vst [vmem:[#allocation9 + $0x18] sm:$0xff] %v460_v59 }
 0x1b3   :  { %v451_v19 = vpop.f32.mrf.mxu0 }
 0x1b4   :  { %463 = vst [vmem:[#allocation9] sm:$0xff] %v451_v19 }
 0x1b9   :  { %v454_v18 = vpop.f32.mrf.mxu1 }
 0x1ba   :  { %464 = vst [vmem:[#allocation9 + $0x8] sm:$0xff] %v454_v18 }
 0x1bb   :  { %479 = dma.vmem_to_hbm [thread:$0]  %s472_s30, 512, %s474_s6, [#allocation5], %s629_s20, %s629_s20, %s630_s21  }
 0x1bc   :  { %626 = dma.done.wait [#allocation5], 512  }
 0x1bd   :  { %627 = vsyncadd [#allocation5], 4294966784 }
 0x1be   :  { %484 = vsyncpa [#allocation4], 1 }
 0x1bf   :  { %485 = vsyncpa [#allocation7], 1 }
 0x1c0   :  { %486 = vsyncpa [#allocation5], 1 }

</bundles_post_ra>
